<compile_context>
chip_gen: v7x
topology: tpu7x:2x2x1
jax: 0.10.0
libtpu: 0.0.40
codegen_flags: <defaults>
</compile_context>

<pallas_src>
import jax
import jax.numpy as jnp
from jax.experimental import pallas as pl
from jax.experimental.pallas import tpu as pltpu


def _downsample_matmul_kernel(w_ref, b_ref, x_ref, o_ref):
    # w_ref : (C_out, K_pad)      VMEM, resident across the whole grid
    # b_ref : (C_out, 1)          VMEM, resident across the whole grid
    # x_ref : (K_pad, tile_p)     VMEM, one im2col column tile of one image
    # o_ref : (C_out, tile_p)     VMEM, lane-dense output tile (NC(HW) order)
    acc = jnp.dot(w_ref[...], x_ref[...], preferred_element_type=jnp.float32)
    o_ref[...] = (acc + b_ref[...]).astype(o_ref.dtype)


def downsample_conv(x, weight, bias, *, target_tile_p=2048):
    """Conv2d(C_in, C_out, kernel_size=3, stride=2, padding=1) forward pass.

    x:      (N, C_in, H, W)        float32, NCHW (PyTorch convention)
    weight: (C_out, C_in, 3, 3)    float32 (PyTorch Conv2d weight layout)
    bias:   (C_out,)               float32
    returns (N, C_out, H_out, W_out) with H_out = (H - 1)//2 + 1 (same for W).
    """
    N, C_in, H, W = x.shape
    C_out, _, KH, KW = weight.shape
    assert (KH, KW) == (3, 3)
    H_out = (H + 2 - 3) // 2 + 1
    W_out = (W + 2 - 3) // 2 + 1
    P = H_out * W_out

    # ---- XLA glue (no transposes of the data): pad + 9 stride-2 decimations ----
    x_pad = jnp.pad(x, ((0, 0), (0, 0), (1, 1), (1, 1)))
    taps = []
    for kh in range(KH):
        for kw in range(KW):
            taps.append(
                x_pad[:, :, kh:kh + 2 * H_out - 1:2, kw:kw + 2 * W_out - 1:2])
    # (N, 9, C_in, H_out, W_out) -> (N, 9*C_in, P): im2col, pixels lane-major.
    x_col = jnp.stack(taps, axis=1).reshape(N, KH * KW * C_in, P)

    # Weight (C_out, C_in, 3, 3) -> (C_out, kh, kw, C_in) -> (C_out, 9*C_in)
    # so the contraction ordering (tap, ci) matches x_col.
    w_flat = jnp.transpose(weight, (0, 2, 3, 1)).reshape(C_out, KH * KW * C_in)
    b_col = bias.reshape(C_out, 1)

    # Pad the contraction dim to a sublane multiple (zeros don't change math).
    K = KH * KW * C_in
    K_pad = ((K + 7) // 8) * 8
    if K_pad != K:
        x_col = jnp.pad(x_col, ((0, 0), (0, K_pad - K), (0, 0)))
        w_flat = jnp.pad(w_flat, ((0, 0), (0, K_pad - K)))

    # Tile the flattened output-pixel (lane) dimension.  Big tiles amortize the
    # ~0.35 us per-grid-step overhead; the working set here (a few hundred KiB)
    # is far below the VMEM budget on v5e/v6e/v7x even double-buffered.
    if P <= target_tile_p:
        tile_p = P                       # single full-extent tile (always legal)
        p_pad = P
    else:
        tile_p = target_tile_p           # multiple of 128 -> unmasked lane-dense stores
        p_pad = pl.cdiv(P, tile_p) * tile_p
    if p_pad != P:
        x_col = jnp.pad(x_col, ((0, 0), (0, 0), (0, p_pad - P)))

    grid = (N, p_pad // tile_p)
    out = pl.pallas_call(
        _downsample_matmul_kernel,
        out_shape=jax.ShapeDtypeStruct((N, C_out, p_pad), x.dtype),
        grid=grid,
        in_specs=[
            pl.BlockSpec((C_out, K_pad), lambda n, j: (0, 0)),       # resident W
            pl.BlockSpec((C_out, 1), lambda n, j: (0, 0)),           # resident bias
            pl.BlockSpec((None, K_pad, tile_p), lambda n, j: (n, 0, j)),
        ],
        out_specs=pl.BlockSpec((None, C_out, tile_p), lambda n, j: (n, 0, j)),
        compiler_params=pltpu.CompilerParams(
            dimension_semantics=("parallel", "parallel"),
            vmem_limit_bytes=48 * 1024 * 1024,   # safe on v7x's 64 MiB, ample on v5e/v6e
        ),
    )(w_flat, b_col, x_col)

    # Drop lane padding (if any) and un-flatten spatial: pure reshape, no transpose.
    return out[:, :, :P].reshape(N, C_out, H_out, W_out)


def _reference(x, weight, bias):
    # Pure-JAX reference of Conv2d(k=3, s=2, p=1) for verification.
    y = jax.lax.conv_general_dilated(
        x, weight, window_strides=(2, 2), padding=((1, 1), (1, 1)),
        dimension_numbers=("NCHW", "OIHW", "NCHW"))
    return y + bias[None, :, None, None]


if __name__ == "__main__":
    key = jax.random.PRNGKey(0)
    kx, kw, kb = jax.random.split(key, 3)

    N, C_in, H, W = 2, 4, 16, 16
    C_out = 2 * C_in  # Downsample doubles the channel count
    x = jax.random.normal(kx, (N, C_in, H, W), dtype=jnp.float32)
    weight = jax.random.normal(kw, (C_out, C_in, 3, 3), dtype=jnp.float32) * 0.1
    bias = jax.random.normal(kb, (C_out,), dtype=jnp.float32) * 0.1

    out = downsample_conv(x, weight, bias)
    out = jax.block_until_ready(out)

    ref = _reference(x, weight, bias)
    assert out.shape == (N, C_out, (H - 1) // 2 + 1, (W - 1) // 2 + 1)
    assert jnp.allclose(out, ref, atol=1e-4, rtol=1e-4), "mismatch vs conv reference"

    print("KERNEL_OK")
</pallas_src>

<mosaic_0001>
module attributes {stable_mosaic.version = 11 : i64} {
  func.func @_downsample_matmul_kernel(%arg0: i32, %arg1: i32, %arg2: memref<8x40xf32, #tpu.memory_space<vmem>>, %arg3: memref<8x1xf32, #tpu.memory_space<vmem>>, %arg4: memref<1x40x64xf32, #tpu.memory_space<vmem>>, %arg5: memref<1x8x64xf32, #tpu.memory_space<vmem>>) attributes {dimension_semantics = [#tpu.dimension_semantics<parallel>, #tpu.dimension_semantics<parallel>], iteration_bounds = array<i64: 2, 1>, scalar_prefetch = 0 : i64, scratch_operands = 0 : i64, tpu.core_type = #tpu.core_type<tc>, window_params = [{pipeline_mode = #tpu.pipeline_mode<synchronous>, transform_indices = @transform_0, window_bounds = array<i64: 8, 40>}, {pipeline_mode = #tpu.pipeline_mode<synchronous>, transform_indices = @transform_1, window_bounds = array<i64: 8, 1>}, {transform_indices = @transform_2, window_bounds = array<i64: 1, 40, 64>}, {transform_indices = @transform_3, window_bounds = array<i64: 1, 8, 64>}]} {
    %c0 = arith.constant 0 : index
    %c0_0 = arith.constant 0 : index
    %0 = vector.load %arg2[%c0, %c0_0] : memref<8x40xf32, #tpu.memory_space<vmem>>, vector<8x40xf32>
    %c0_1 = arith.constant 0 : index
    %c0_2 = arith.constant 0 : index
    %c0_3 = arith.constant 0 : index
    %1 = vector.load %arg4[%c0_1, %c0_2, %c0_3] : memref<1x40x64xf32, #tpu.memory_space<vmem>>, vector<1x40x64xf32>
    %2 = vector.shape_cast %1 : vector<1x40x64xf32> to vector<40x64xf32>
    %cst = arith.constant dense<0.000000e+00> : vector<8x64xf32>
    %3 = tpu.matmul %0, %2, %cst {dimension_numbers = #tpu.dot_dimension_numbers<[1], [0], [0], [1], [0, 0, 1, 1], [], []>} : vector<8x40xf32>, vector<40x64xf32>, vector<8x64xf32> -> vector<8x64xf32>
    %c0_4 = arith.constant 0 : index
    %c0_5 = arith.constant 0 : index
    %4 = vector.load %arg3[%c0_4, %c0_5] : memref<8x1xf32, #tpu.memory_space<vmem>>, vector<8x1xf32>
    %5 = vector.broadcast %4 : vector<8x1xf32> to vector<8x64xf32>
    %6 = arith.addf %3, %5 : vector<8x64xf32>
    %c0_6 = arith.constant 0 : index
    %c0_7 = arith.constant 0 : index
    %c0_8 = arith.constant 0 : index
    %7 = vector.load %arg5[%c0_6, %c0_7, %c0_8] : memref<1x8x64xf32, #tpu.memory_space<vmem>>, vector<1x8x64xf32>
    %8 = vector.shape_cast %7 : vector<1x8x64xf32> to vector<8x64xf32>
    %9 = vector.shape_cast %6 : vector<8x64xf32> to vector<1x8x64xf32>
    tpu.vector_store %arg5[%c0_6, %c0_7, %c0_8], %9 {strides = array<i32>} : memref<1x8x64xf32, #tpu.memory_space<vmem>>, vector<1x8x64xf32>,
    return
  }
  func.func @transform_0(%arg0: i32, %arg1: i32) -> (i32, i32) {
    %c0_i32 = arith.constant 0 : i32
    %c0_i32_0 = arith.constant 0 : i32
    %c0_i32_1 = arith.constant 0 : i32
    return %c0_i32, %c0_i32_0 : i32, i32
  }
  func.func @transform_1(%arg0: i32, %arg1: i32) -> (i32, i32) {
    %c0_i32 = arith.constant 0 : i32
    %c0_i32_0 = arith.constant 0 : i32
    %c0_i32_1 = arith.constant 0 : i32
    return %c0_i32, %c0_i32_0 : i32, i32
  }
  func.func @transform_2(%arg0: i32, %arg1: i32) -> (i32, i32, i32) {
    %c0_i32 = arith.constant 0 : i32
    %c0_i32_0 = arith.constant 0 : i32
    return %arg0, %c0_i32, %arg1 : i32, i32, i32
  }
  func.func @transform_3(%arg0: i32, %arg1: i32) -> (i32, i32, i32) {
    %c0_i32 = arith.constant 0 : i32
    %c0_i32_0 = arith.constant 0 : i32
    return %arg0, %c0_i32, %arg1 : i32, i32, i32
  }
}

</mosaic_0001>

<bundles_post_ra>
// kernel: tpu_custom_call.1
= control target key start
LH: loop header
LB: loop body
LE: loop exit
PB: predicated region body
PF: predicated region fallthrough
CT: control target
= control target key end

     0   :  { %8 = vsyncpa [#allocation3], 0  ;;  %s821_s0 = inlined_call_operand.vmem [shape: f32[8,40], index: 0, kind: input, shape index: {}]   ;;  %s822_s1 = inlined_call_operand.vmem [shape: f32[8,1], index: 1, kind: input, shape index: {}]   ;;  %s823_s2 = inlined_call_operand.hbm [shape: f32[2,40,64], index: 2, kind: input, shape index: {}]   ;;  %s824_s3 = inlined_call_operand.hbm [shape: f32[2,8,64], index: 3, kind: output, shape index: {}]  }
   0x1   :  { %10 = vsyncpa [#allocation3 + $0x1], 0 }
   0x2   :  { %11 = vsyncpa [#allocation4], 0 }
   0x3   :  { %13 = vsyncpa [#allocation4 + $0x1], 0  ;;  %s641_s12 = smov 0   ;;  %s643_s13 = smov 0  }
   0x4   :  { %s645_s14 = smov 0   ;;  %s647_s15 = smov 0  }
   0x5   :  { %s649_s16 = smov 0   ;;  %s651_s17 = smov 0  }
   0x6 LB: > { %s390_s18 = sadd.s32 4294967295, %s611_s17   ;;  %s391_s19 = sadd.s32 4294967294, %s611_s17   ;;  %s611_s17 = sphi %s651_s17, %s19_s17   ;;  %s607_s16 = sphi %s649_s16, %s839_s16   ;;  %s603_s15 = sphi %s647_s15, %s838_s15   ;;  %s599_s14 = sphi %s645_s14, %s837_s14   ;;  %s595_s13 = sphi %s643_s13, %s836_s13   ;;  %s591_s12 = sphi %s641_s12, %s835_s12  }
   0x7   : > { %s31_s20 = sadd.s32 1, %s607_s16  ;;  %s82_s21 = sadd.s32 1, %s599_s14 }
   0x8   : > { %p33_p0 = scmp.ge.s32.totalorder %s31_s20, 2  ;;  %p89_p1 = scmp.ne.s32.totalorder %s599_s14, %s595_s13 }
   0x9   : > { %p90_p2 = scmp.eq.s32.totalorder %s611_s17, 0  ;;  %p95_p3 = scmp.ne.s32.totalorder %s595_s13, %s591_s12 }
   0xa   : > { %s841_s20 = smov (%p33_p0, %s31_s20), 0  ;;  %p96_p5 = scmp.eq.s32.totalorder %s390_s18, 0 }
   0xb   : > { %p682_p4 = por %p90_p2, %p89_p1  ;;  %s77_s23 = ssub.s32 %s607_s16, %s841_s20 }
   0xc   : > { %p121_p6 = scmp.eq.s32.totalorder %s390_s18, 1  ;;  %p80_p7 = scmp.eq.s32.totalorder %s77_s23, 0 }
   0xd   : > { %p688_p8 = por %p96_p5, %p95_p3  ;;  %p127_p10 = scmp.eq.s32.totalorder %s391_s19, 1 }
   0xe   : > { %p692_p9 = por %p121_p6, %p89_p1  ;;  %p442_p13 = scmp.lt.s32.totalorder %s611_s17, 2 }
   0xf   : > { %s697_s26 = scalar_select %p80_p7, %s599_s14, %s82_s21  }
  0x10   : > { %s828_s25 = scalar_select %p692_p9, 1, 0 }
  0x11   : > { %p699_p11 = por %p127_p10, %p95_p3  ;;  %s153_s28 = sand.u32 1, %s599_s14  }
  0x12   : > { %s427_s29 = smul.u32 40, %s153_s28  ;;  %p709_p0 = pnand %p442_p13, %p682_p4 }
  0x13   : > { %s829_s27 = scalar_select %p699_p11, 1, 0 }
  0x14   : > { %s428_s30 = smul.u32 640, %s607_s16  ;;  %s157_s8 = scalar_lea.vmem [#allocation2], %s427_s29 }
  0x15   : > { %s165_s9 = sshll.u32 %s157_s8, 4  ;;  %s721_s10 = scalar_lea.sflag [#allocation3], %s153_s28  ;;  %s718_s9 = int_to_ptr.vmem [resolvable:$true] %s165_s9 }
  0x16   : > { %s716_s7 = scalar_lea.hbm %s823_s2, %s428_s30  ;;  %p501_p3 = pneg %p709_p0 }
  0x17   : > { %s499_s11 = scalar_lea.hbm %s716_s7, 640  ;;  %s504_s21 = scalar_lea.hbm %s823_s2, 1280 }
  0x18   : > { %p500_p2 = scmp.ne.s32.totalorder %s716_s7, %s499_s11  ;;  %p505_p6 = scmp.lt.u32.totalorder %s716_s7, %s823_s2 }
  0x19   : > { %p506_p7 = scmp.lt.u32.totalorder %s504_s21, %s499_s11  ;;  %p508_p13 = scmp.lt.u32.totalorder %s499_s11, %s716_s7 }
  0x1a   : > { %p502_p4 = pnand %p501_p3, %p500_p2 }
  0x1b   : > { %p507_p10 = por %p506_p7, %p505_p6 }
  0x1c   : > { %p503_p5 = pneg %p502_p4 }
  0x1d   : > { %p509_p12 = por %p508_p13, %p507_p10 }
  0x1f   : > { %p510_p1 = pnand %p509_p12, %p503_p5 }
  0x21   : > { %513 = shalt.err (!%p510_p1)
}
  0x22   : > { %s514_s28 = scalar_lea.vmem %s718_s9, 640  ;;  %s613_s29 = smov [#allocation2]  }
  0x23   : > { %p515_p2 = scmp.ne.s32.totalorder %s718_s9, %s514_s28  ;;  %s519_s30 = sshll.u32 %s613_s29, 4  ;;  %s520_s30 = int_to_ptr.vmem [resolvable:$false] %s519_s30 }
  0x24   : > { %s521_s5 = scalar_lea.vmem %s520_s30, 1280  ;;  %p522_p9 = scmp.lt.s32.totalorder %s718_s9, %s520_s30 }
  0x25   : > { %p517_p4 = pnand %p515_p2, %p501_p3  ;;  %p523_p6 = scmp.lt.s32.totalorder %s521_s5, %s514_s28 }
  0x27   : > { %p518_p11 = pneg %p517_p4  ;;  %p524_p7 = por %p523_p6, %p522_p9 }
  0x29   : > { %p525_p10 = pnand %p524_p7, %p518_p11 }
  0x2b   : > { %528 = shalt.err (!%p525_p10)
}
  0x2c   : > { %s614_s6 = smov 128   ;;  %s615_s8 = smov 8  }
  0x2d   : > { %437 = dma.hbm_to_vmem [thread:$0]  (!%p709_p0), %s716_s7, 640, %s718_s9, %s721_s10, %s614_s6, %s614_s6, %s615_s8  }
  0x2e   : > { %p173_p12 = scmp.lt.s32.totalorder %s611_s17, 3  ;;  %p831_p1 = scmp.ge.s32.totalorder %s611_s17, 1 }
  0x30   : > { %p174_p3 = pnand %p831_p1, %p173_p12 }
  0x31   : > { %s753_s11 = sand.u32 (!%p174_p3), 1, %s595_s13  }
  0x32   : > { %177 = sbr.rel (%p174_p3) target bundleno = 299 (0x12b), region = 32  ;;  %s180_s19 = scalar_lea.sflag (!%p174_p3), [#allocation3], %s753_s11 }
  0x33   : > { %s429_s18 = smul.u32 (!%p174_p3), 40, %s753_s11 }
  0x35   : > { %s183_s21 = scalar_lea.vmem (!%p174_p3), [#allocation2], %s429_s18 }
  0x39   : > { %582 = dma.done.wait (%p688_p8), %s180_s19, 640  }
  0x3a   : > { %584 = vsyncadd (%p688_p8), %s180_s19, 4294966656  ;;  %v616_v0 = vmov 0.0|0.0   ;;  %vm617_vm0 = vmmov 0   ;;  %v618_v1 = vmov 0.0   ;;  %v619_v2 = vmov 0   ;;  %v207_v3 = vld [vmem:[%s183_s21] sm:$0xff] }
  0x3b   : > { %421 = vmatprep.subr.bf16.mxu0 %v616_v0  ;;  %418 = vmatprep.mubr.msk.f32.mxu0 %vm617_vm0, %v618_v1  ;;  %v208_v4 = vld [vmem:[%s183_s21 + $0x8] sm:$0xff]  ;;  %v209_v5 = vld [vmem:[%s183_s21 + $0x10] sm:$0xff]  ;;  %v210_v7 = vld [vmem:[%s183_s21 + $0x18] sm:$0xff]  ;;  %vm218_vm1 = vcmask 326656   ;;  %s396_s10 = sshll.u32 %s753_s11, 3  ;;  %s399_s22 = sshll.u32 %s603_s15, 7 }
  0x3c   : > { %498 = vset.pattern.permute.xlu0 %v619_v2  ;;  %v422_v6 = vpack.c.bf16 %v208_v4, %v207_v3  ;;  %v212_v8 = vld [vmem:[%s822_s1] sm:$0xff]  ;;  %v425_v9 = vpack.c.bf16 %v210_v7, %v209_v5  ;;  %s205_s23 = scalar_lea.vmem [#allocation5], %s396_s10  ;;  %vm292_vm2 = vcmask 523264   ;;  %s772_s5 = scalar_lea.hbm %s824_s3, %s399_s22 }
  0x3d   : > { %215 = vperm.xlu0 %498, %v212_v8   ;;  %v211_v10 = vld [vmem:[%s183_s21 + $0x20] sm:$0xff]  ;;  %s309_s28 = sshll.u32 %s205_s23, 4  ;;  %s295_s6 = scalar_lea.sflag [#allocation4], %s753_s11  ;;  %s774_s28 = int_to_ptr.vmem [resolvable:$true] %s309_s28 }
  0x3e   : > { %423 = vmatpush3.bf16.msra.mxu0 %v422_v6  ;;  %v206_v11 = vld [vmem:[%s821_s0] sm:$0xff]  ;;  %s529_s8 = scalar_lea.vmem %s774_s28, 128  ;;  %p832_p9 = scmp.ne.s32.totalorder %s828_s25, 0 }
  0x3f   : > { %424 = vmatprep.subr.bf16.mxu0 %v616_v0  ;;  %p530_p8 = scmp.ne.s32.totalorder %s774_s28, %s529_s8  ;;  %s620_s15 = smov [#allocation5]  }
  0x40   : > { %s533_s18 = sshll.u32 %s620_s15, 4  ;;  %s534_s18 = int_to_ptr.vmem [resolvable:$false] %s533_s18 }
  0x41   : > { %p531_p11 = pnand %p530_p8, %p832_p9  ;;  %s535_s19 = scalar_lea.vmem %s534_s18, 256 }
  0x42   : > { %426 = vmatpush3.bf16.msra.mxu0 %v425_v9  ;;  %p536_p5 = scmp.lt.s32.totalorder %s774_s28, %s534_s18  ;;  %p537_p13 = scmp.lt.s32.totalorder %s535_s19, %s529_s8 }
  0x43   : > { %416 = vmatprep.subr.mxu0 %v618_v1  ;;  %p532_p0 = pneg %p531_p11 }
  0x44   : > { %p538_p2 = por %p537_p13, %p536_p5 }
  0x46   : > { %417 = vmatpush3.msra.mxu0 %v211_v10  ;;  %p539_p4 = pnand %p538_p2, %p532_p0 }
  0x47   : > { %419 = vmatmul.mubr.msk.f32.vlgmr.msra.gmra.mrb[0].mxu0 %vm218_vm1, %v206_v11 }
  0xbc   : > { %v216_v12 = vpop.permute.xlu0 %215 }
 0x11a   : > { %v288_v13 = vpop.f32.mrb[0].mxu0 }
 0x11b   : > { %v289_v14 = vadd.f32 %v288_v13, %v216_v12  ;;  %v420_v15 = vpop.f32.mrb[1].mxu0 }
 0x11d   : > { %293 = vst.msk [vmem:[%s205_s23] sm:$0xff] %vm292_vm2, %v289_v14 }
 0x11e   : > { %542 = shalt.err (!%p539_p4)
}
 0x11f   : > { %s543_s11 = scalar_lea.hbm %s772_s5, 128  ;;  %s547_s7 = scalar_lea.hbm %s824_s3, 256 }
 0x120   : > { %p544_p6 = scmp.ne.s32.totalorder %s772_s5, %s543_s11  ;;  %p548_p12 = scmp.lt.u32.totalorder %s772_s5, %s824_s3 }
 0x121   : > { %p549_p1 = scmp.lt.u32.totalorder %s547_s7, %s543_s11  ;;  %p551_p8 = scmp.lt.u32.totalorder %s543_s11, %s772_s5 }
 0x122   : > { %p545_p7 = pnand %p544_p6, %p832_p9 }
 0x123   : > { %p550_p3 = por %p549_p1, %p548_p12 }
 0x124   : > { %p546_p10 = pneg %p545_p7 }
 0x125   : > { %p552_p11 = por %p551_p8, %p550_p3 }
 0x127   : > { %p553_p0 = pnand %p552_p11, %p546_p10 }
 0x129   : > { %556 = shalt.err (!%p553_p0)
}
 0x12a   : > { %432 = dma.vmem_to_hbm [thread:$0]  (%p832_p9), %s774_s28, 128, %s772_s5, %s295_s6  }
 0x12b PF: > { %s321_s10 = sand.u32 1, %s591_s12   ;;  %p833_p5 = scmp.ne.s32.totalorder %s829_s27, 0 }
 0x12c   : > { %p834_p13 = scmp.ge.s32.totalorder %s611_s17, 2  ;;  %s322_s22 = scalar_lea.sflag [#allocation4], %s321_s10 }
 0x12e   : > { %p439_p2 = pnand %p834_p13, %p833_p5 }
 0x130   : > { %586 = dma.done.wait (!%p439_p2), %s322_s22, 128  }
 0x131   : > { %588 = vsyncadd (!%p439_p2), %s322_s22, 4294967168  ;;  %s19_s17 = sadd.s32 1, %s611_s17   ;;  %s835_s12 = smov %s595_s13 }
 0x132   : > { %p16_p4 = scmp.ge.s32.totalorder %s19_s17, 4   ;;  %s836_s13 = smov %s599_s14 }
 0x133   : > { %s837_s14 = smov %s697_s26  ;;  %s838_s15 = smov %s607_s16 }
 0x134   : > { %s839_s16 = smov %s841_s20  ;;  %18 = sbr.rel (!%p16_p4) target bundleno = 6 (0x6), region = 77 }
 0x13b   :  { %327 = vsyncpa [#allocation3], 1 }
 0x13c   :  { %329 = vsyncpa [#allocation3 + $0x1], 1 }
 0x13d   :  { %330 = vsyncpa [#allocation4], 1 }
 0x13e   :  { %332 = vsyncpa [#allocation4 + $0x1], 1 }

</bundles_post_ra>
